<compile_context>
chip_gen: v7x
topology: tpu7x:2x2x1
jax: 0.10.0
libtpu: 0.0.40
codegen_flags: <defaults>
</compile_context>

<pallas_src>
import functools

import jax
import jax.numpy as jnp
from jax import lax
from jax.experimental import pallas as pl
from jax.experimental.pallas import tpu as pltpu


def _round_up(x, m):
    return ((x + m - 1) // m) * m


def _edge_mlp_kernel(x_ref, w_ref, b_ref, out_ref):
    # x: (2, TE, F) compute dtype -- x[0] = h[src] rows, x[1] = h[dst] rows.
    # w: (2, C, F)  compute dtype -- w[0] = W[:, :F],   w[1] = W[:, F:].
    # b: (C, 1) f32.   out: (C, TE) f32 (transposed, lane-dense scores).
    dn = (((1,), (1,)), ((), ()))          # contract F with F  ->  (C, TE)
    s = lax.dot_general(w_ref[0], x_ref[0], dn,
                        preferred_element_type=jnp.float32)
    s = s + lax.dot_general(w_ref[1], x_ref[1], dn,
                            preferred_element_type=jnp.float32)
    # f32 epilogue (bias + store); TE % 128 == 0 -> unmasked full-lane stores.
    out_ref[...] = (s + b_ref[...]).astype(out_ref.dtype)


@functools.partial(jax.jit, static_argnames=("edge_tile", "compute_dtype"))
def mlp_predictor_forward(h, src, dst, W, b, *, edge_tile=None,
                          compute_dtype=jnp.bfloat16):
    """h: [N, F] node features; src/dst: [E] int32 edge endpoints; W: [C, 2F]
    (PyTorch Linear layout); b: [C].  Returns edge scores [E, C] in float32."""
    N, F = h.shape
    C = W.shape[0]
    E = src.shape[0]
    cdtype = jnp.dtype(compute_dtype)
    dsize = cdtype.itemsize

    # ---- generation-aware VMEM budget ---------------------------------------
    try:
        vmem_cap = int(pltpu.get_tpu_info().vmem_capacity_bytes)
    except Exception:
        vmem_cap = 64 << 20                       # conservative (v7x-sized) fallback
    budget = min((vmem_cap * 3) // 4, 100 << 20)  # ~48 MiB v7x, ~96 MiB v5e/v6e

    # ---- lane-padding-aware VMEM footprint of all pipeline buffers ----------
    lane = lambda n: _round_up(max(int(n), 1), 128)
    sub = lambda n, d: _round_up(max(int(n), 1),
                                 16 if jnp.dtype(d).itemsize < 4 else 8)

    def working_set(t):
        x_blk = 2 * t * lane(F) * dsize                 # (2, t, F) edge stream
        o_blk = sub(C, jnp.float32) * t * 4             # (C, t) f32 output
        w_blk = 2 * sub(C, cdtype) * lane(F) * dsize    # resident weight halves
        b_blk = sub(C, jnp.float32) * lane(1) * 4       # bias
        return 2 * (x_blk + o_blk) + 2 * (w_blk + b_blk)    # double-buffered

    # ---- edge-tile selection --------------------------------------------------
    if edge_tile is None:
        # >= ~1 MiB of streamed features per grid step covers the ~0.35us/step
        # pipeline overhead even at v7x's ~3.2 TB/s HBM (more than enough on
        # v5e/v6e); clamped to [512, 8192] edges and to the padded edge count.
        target = max((1 << 20) // max(2 * F * dsize, 1), 1)
        tile = int(min(max(pl.next_power_of_2(int(target)), 512), 8192))
    else:
        tile = _round_up(int(edge_tile), 128)
    tile = max(128, min(tile, _round_up(E, 128)))
    tile = _round_up(tile, 128)
    while tile > 128 and working_set(tile) > budget:
        tile = max(128, (tile // 2) // 128 * 128)

    E_pad = _round_up(E, tile)
    grid = (E_pad // tile,)
    pad = E_pad - E

    # ---- glue: ONE fused gather -> (2, E_pad, F) edge-feature slab -----------
    idx = jnp.concatenate([
        jnp.pad(src.astype(jnp.int32), (0, pad)),   # padded edges read row 0,
        jnp.pad(dst.astype(jnp.int32), (0, pad)),   # sliced off below
    ])
    x = jnp.take(h.astype(cdtype), idx, axis=0).reshape(2, E_pad, F)

    # Weight halves (2, C, F) in the PyTorch (C, *) orientation, f32 bias column.
    Wh = jnp.stack([W[:, :F], W[:, F:]], axis=0).astype(cdtype)
    b2 = b.astype(jnp.float32).reshape(C, 1)

    # ---- cost model + compiler params ----------------------------------------
    # (advisory only; the XLA-side gather traffic happens outside this call)
    bytes_accessed = (2 * E_pad * F * dsize      # fused edge-feature stream
                      + 2 * C * F * dsize        # resident weights
                      + C * 4                    # bias
                      + E_pad * C * 4)           # transposed output
    cost = pl.CostEstimate(flops=2 * (2 * F) * C * E_pad, transcendentals=0,
                           bytes_accessed=bytes_accessed)
    ws = working_set(tile)
    vmem_limit = int(min(budget, max(32 << 20, ws + (16 << 20))))

    out_t = pl.pallas_call(
        _edge_mlp_kernel,
        out_shape=jax.ShapeDtypeStruct((C, E_pad), jnp.float32),
        grid_spec=pltpu.PrefetchScalarGridSpec(
            num_scalar_prefetch=0,
            grid=grid,
            in_specs=[
                pl.BlockSpec((2, tile, F), lambda i: (0, i, 0)),  # edge stream
                pl.BlockSpec((2, C, F), lambda i: (0, 0, 0)),     # weights (resident)
                pl.BlockSpec((C, 1), lambda i: (0, 0)),           # bias (resident)
            ],
            out_specs=pl.BlockSpec((C, tile), lambda i: (0, i)),  # lane-dense
        ),
        compiler_params=pltpu.CompilerParams(
            dimension_semantics=("parallel",),   # shard tiles over v7x's 2 TCs
            vmem_limit_bytes=vmem_limit),
        cost_estimate=cost,
    )(x, Wh, b2)

    # Back to the PyTorch layout: (E, C).
    return out_t[:, :E].T


if __name__ == "__main__":
    # Small synthetic "graph": N nodes, E edges, F in_features, C out_classes.
    N, F, C, E = 16, 32, 8, 24
    key = jax.random.PRNGKey(0)
    k_h, k_w, k_b, k_s, k_d = jax.random.split(key, 5)

    h = jax.random.normal(k_h, (N, F), dtype=jnp.float32)
    src = jax.random.randint(k_s, (E,), 0, N, dtype=jnp.int32)
    dst = jax.random.randint(k_d, (E,), 0, N, dtype=jnp.int32)

    # Deterministic Linear(2F, C) init (PyTorch-style uniform bound 1/sqrt(2F)).
    bound = 1.0 / jnp.sqrt(jnp.float32(2 * F))
    W = jax.random.uniform(k_w, (C, 2 * F), minval=-bound, maxval=bound,
                           dtype=jnp.float32)
    b = jax.random.uniform(k_b, (C,), minval=-bound, maxval=bound,
                           dtype=jnp.float32)

    # Exact-precision switch (matches the f32 PyTorch Linear semantics).
    scores_f32 = mlp_predictor_forward(h, src, dst, W, b,
                                       compute_dtype=jnp.float32)
    jax.block_until_ready(scores_f32)
    assert scores_f32.shape == (E, C)
    ref = jnp.dot(jnp.concatenate([h[src], h[dst]], axis=1), W.T,
                  precision=jax.lax.Precision.HIGHEST) + b
    assert jnp.allclose(scores_f32, ref, atol=5e-3, rtol=5e-3), (
        float(jnp.max(jnp.abs(scores_f32 - ref))))

    # Default fast path: bf16 streaming, f32 accumulation / epilogue.
    scores_bf = mlp_predictor_forward(h, src, dst, W, b)
    jax.block_until_ready(scores_bf)
    assert scores_bf.shape == (E, C)
    hr = h.astype(jnp.bfloat16).astype(jnp.float32)
    Wr = W.astype(jnp.bfloat16).astype(jnp.float32)
    ref_bf = jnp.dot(jnp.concatenate([hr[src], hr[dst]], axis=1), Wr.T,
                     precision=jax.lax.Precision.HIGHEST) + b
    assert jnp.allclose(scores_bf, ref_bf, atol=2e-3, rtol=2e-3), (
        float(jnp.max(jnp.abs(scores_bf - ref_bf))))

    print("KERNEL_OK")
</pallas_src>

<mosaic_0001>
module attributes {stable_mosaic.version = 11 : i64} {
  func.func @_edge_mlp_kernel(%arg0: i32, %arg1: memref<2x128x32xf32, #tpu.memory_space<vmem>>, %arg2: memref<2x8x32xf32, #tpu.memory_space<vmem>>, %arg3: memref<8x1xf32, #tpu.memory_space<vmem>>, %arg4: memref<8x128xf32, #tpu.memory_space<vmem>>) attributes {dimension_semantics = [#tpu.dimension_semantics<parallel>], iteration_bounds = array<i64: 1>, scalar_prefetch = 0 : i64, scratch_operands = 0 : i64, tpu.core_type = #tpu.core_type<tc>, window_params = [{transform_indices = @transform_0, window_bounds = array<i64: 2, 128, 32>}, {pipeline_mode = #tpu.pipeline_mode<synchronous>, transform_indices = @transform_1, window_bounds = array<i64: 2, 8, 32>}, {pipeline_mode = #tpu.pipeline_mode<synchronous>, transform_indices = @transform_2, window_bounds = array<i64: 8, 1>}, {transform_indices = @transform_3, window_bounds = array<i64: 8, 128>}]} {
    %c0 = arith.constant 0 : index
    %c0_0 = arith.constant 0 : index
    %c0_1 = arith.constant 0 : index
    %0 = vector.load %arg2[%c0, %c0_0, %c0_1] : memref<2x8x32xf32, #tpu.memory_space<vmem>>, vector<1x8x32xf32>
    %1 = vector.shape_cast %0 : vector<1x8x32xf32> to vector<8x32xf32>
    %c0_2 = arith.constant 0 : index
    %c0_3 = arith.constant 0 : index
    %c0_4 = arith.constant 0 : index
    %2 = vector.load %arg1[%c0_2, %c0_3, %c0_4] : memref<2x128x32xf32, #tpu.memory_space<vmem>>, vector<1x128x32xf32>
    %3 = vector.shape_cast %2 : vector<1x128x32xf32> to vector<128x32xf32>
    %cst = arith.constant dense<0.000000e+00> : vector<8x128xf32>
    %4 = tpu.matmul %1, %3, %cst {dimension_numbers = #tpu.dot_dimension_numbers<[1], [1], [0], [0], [0, 0, 1, 0], [], []>} : vector<8x32xf32>, vector<128x32xf32>, vector<8x128xf32> -> vector<8x128xf32>
    %c1 = arith.constant 1 : index
    %c0_5 = arith.constant 0 : index
    %c0_6 = arith.constant 0 : index
    %5 = vector.load %arg2[%c1, %c0_5, %c0_6] : memref<2x8x32xf32, #tpu.memory_space<vmem>>, vector<1x8x32xf32>
    %6 = vector.shape_cast %5 : vector<1x8x32xf32> to vector<8x32xf32>
    %c1_7 = arith.constant 1 : index
    %c0_8 = arith.constant 0 : index
    %c0_9 = arith.constant 0 : index
    %7 = vector.load %arg1[%c1_7, %c0_8, %c0_9] : memref<2x128x32xf32, #tpu.memory_space<vmem>>, vector<1x128x32xf32>
    %8 = vector.shape_cast %7 : vector<1x128x32xf32> to vector<128x32xf32>
    %cst_10 = arith.constant dense<0.000000e+00> : vector<8x128xf32>
    %9 = tpu.matmul %6, %8, %cst_10 {dimension_numbers = #tpu.dot_dimension_numbers<[1], [1], [0], [0], [0, 0, 1, 0], [], []>} : vector<8x32xf32>, vector<128x32xf32>, vector<8x128xf32> -> vector<8x128xf32>
    %10 = arith.addf %4, %9 : vector<8x128xf32>
    %c0_11 = arith.constant 0 : index
    %c0_12 = arith.constant 0 : index
    %11 = vector.load %arg3[%c0_11, %c0_12] : memref<8x1xf32, #tpu.memory_space<vmem>>, vector<8x1xf32>
    %12 = vector.broadcast %11 : vector<8x1xf32> to vector<8x128xf32>
    %13 = arith.addf %10, %12 : vector<8x128xf32>
    %c0_13 = arith.constant 0 : index
    %c0_14 = arith.constant 0 : index
    %14 = vector.load %arg4[%c0_13, %c0_14] : memref<8x128xf32, #tpu.memory_space<vmem>>, vector<8x128xf32>
    tpu.vector_store %arg4[%c0_13, %c0_14], %13 {strides = array<i32>} : memref<8x128xf32, #tpu.memory_space<vmem>>, vector<8x128xf32>,
    return
  }
  func.func @transform_0(%arg0: i32) -> (i32, i32, i32) {
    %c0_i32 = arith.constant 0 : i32
    %c0_i32_0 = arith.constant 0 : i32
    %c0_i32_1 = arith.constant 0 : i32
    return %c0_i32, %arg0, %c0_i32_0 : i32, i32, i32
  }
  func.func @transform_1(%arg0: i32) -> (i32, i32, i32) {
    %c0_i32 = arith.constant 0 : i32
    %c0_i32_0 = arith.constant 0 : i32
    %c0_i32_1 = arith.constant 0 : i32
    %c0_i32_2 = arith.constant 0 : i32
    return %c0_i32, %c0_i32_0, %c0_i32_1 : i32, i32, i32
  }
  func.func @transform_2(%arg0: i32) -> (i32, i32) {
    %c0_i32 = arith.constant 0 : i32
    %c0_i32_0 = arith.constant 0 : i32
    %c0_i32_1 = arith.constant 0 : i32
    return %c0_i32, %c0_i32_0 : i32, i32
  }
  func.func @transform_3(%arg0: i32) -> (i32, i32) {
    %c0_i32 = arith.constant 0 : i32
    %c0_i32_0 = arith.constant 0 : i32
    return %c0_i32, %arg0 : i32, i32
  }
}

</mosaic_0001>

<bundles_post_ra>
// kernel: mlp_predictor_forward.1
= control target key start
LH: loop header
LB: loop body
LE: loop exit
PB: predicated region body
PF: predicated region fallthrough
CT: control target
= control target key end

     0   :  { %vm50_vm0 = vcmask 261120   ;;  %v529_v0 = vmov 0.0|0.0   ;;  %vm530_vm2 = vmmov 0   ;;  %v531_v7 = vmov 0.0   ;;  %s717_s0 = inlined_call_operand.vmem [shape: f32[2,128,32], index: 0, kind: input, shape index: {}]   ;;  %s718_s2 = inlined_call_operand.vmem [shape: f32[8,1], index: 2, kind: input, shape index: {}]   ;;  %s719_s1 = inlined_call_operand.vmem [shape: f32[2,8,32], index: 1, kind: input, shape index: {}]   ;;  %s720_s3 = inlined_call_operand.vmem [shape: f32[8,128], index: 3, kind: output, shape index: {}]  }
   0x1   :  { %460 = vmatprep.subr.bf16.mxu0 %v529_v0  ;;  %492 = vmatprep.subr.bf16.mxu1 %v529_v0  ;;  %v306_v1 = vld [vmem:[%s717_s0 + $0x80] sm:$0xff]  ;;  %v307_v2 = vld [vmem:[%s717_s0 + $0x88] sm:$0xff]  ;;  %vm563_vm1 = vmpackc.low %vm50_vm0, %vm50_vm0  ;;  %v532_v9 = vmov 0  }
   0x2   :  { %v461_v4 = vpack.c.bf16 %v307_v2, %v306_v1  ;;  %v15_v5 = vld [vmem:[%s717_s0] sm:$0xff]  ;;  %v16_v6 = vld [vmem:[%s717_s0 + $0x8] sm:$0xff]  ;;  %422 = vmatprep.mubr.msk.f32.mxu0 %vm530_vm2, %v531_v7  ;;  %457 = vmatprep.mubr.msk.f32.mxu1 %vm530_vm2, %v531_v7  ;;  %v308_v10 = vld [vmem:[%s717_s0 + $0x90] sm:$0xff] }
   0x3   :  { %v493_v8 = vpack.c.bf16 %v16_v6, %v15_v5  ;;  %528 = vset.pattern.permute.xlu0 %v532_v9  ;;  %v309_v11 = vld [vmem:[%s717_s0 + $0x98] sm:$0xff]  ;;  %v17_v12 = vld [vmem:[%s717_s0 + $0x10] sm:$0xff]  ;;  %v293_v16 = vld [vmem:[%s718_s2] sm:$0xff] }
   0x4   :  { %463 = vmatpush3.bf16.xpose.msk.msra.mxu0 %vm563_vm1, %v461_v4  ;;  %v18_v13 = vld [vmem:[%s717_s0 + $0x18] sm:$0xff]  ;;  %v465_v14 = vpack.c.bf16 %v309_v11, %v308_v10  ;;  %v310_v17 = vld [vmem:[%s717_s0 + $0xa0] sm:$0xff]  ;;  %v311_v18 = vld [vmem:[%s717_s0 + $0xa8] sm:$0xff]  ;;  %296 = vperm.xlu0 %528, %v293_v16  }
   0x5   :  { %495 = vmatpush3.bf16.xpose.msk.msra.mxu1 %vm563_vm1, %v493_v8  ;;  %464 = vmatprep.subr.bf16.mxu0 %v529_v0  ;;  %v497_v15 = vpack.c.bf16 %v18_v13, %v17_v12  ;;  %v19_v19 = vld [vmem:[%s717_s0 + $0x20] sm:$0xff]  ;;  %v20_v20 = vld [vmem:[%s717_s0 + $0x28] sm:$0xff]  ;;  %v469_v21 = vpack.c.bf16 %v311_v18, %v310_v17  ;;  %v312_v23 = vld [vmem:[%s717_s0 + $0xb0] sm:$0xff] }
   0x6   :  { %496 = vmatprep.subr.bf16.mxu1 %v529_v0  ;;  %v501_v22 = vpack.c.bf16 %v20_v20, %v19_v19  ;;  %v313_v24 = vld [vmem:[%s717_s0 + $0xb8] sm:$0xff]  ;;  %v21_v25 = vld [vmem:[%s717_s0 + $0x30] sm:$0xff]  ;;  %v314_v29 = vld [vmem:[%s717_s0 + $0xc0] sm:$0xff] }
   0x7   :  { %v22_v26 = vld [vmem:[%s717_s0 + $0x38] sm:$0xff]  ;;  %v473_v27 = vpack.c.bf16 %v313_v24, %v312_v23  ;;  %v315_v30 = vld [vmem:[%s717_s0 + $0xc8] sm:$0xff]  ;;  %v23_v31 = vld [vmem:[%s717_s0 + $0x40] sm:$0xff] }
   0x8   :  { %v505_v28 = vpack.c.bf16 %v22_v26, %v21_v25  ;;  %v24_v32 = vld [vmem:[%s717_s0 + $0x48] sm:$0xff]  ;;  %v477_v33 = vpack.c.bf16 %v315_v30, %v314_v29  ;;  %v316_v35 = vld [vmem:[%s717_s0 + $0xd0] sm:$0xff]  ;;  %v317_v36 = vld [vmem:[%s717_s0 + $0xd8] sm:$0xff] }
   0x9   :  { %v509_v34 = vpack.c.bf16 %v24_v32, %v23_v31  ;;  %v25_v37 = vld [vmem:[%s717_s0 + $0x50] sm:$0xff]  ;;  %v26_v38 = vld [vmem:[%s717_s0 + $0x58] sm:$0xff]  ;;  %v481_v39 = vpack.c.bf16 %v317_v36, %v316_v35  ;;  %v318_v41 = vld [vmem:[%s717_s0 + $0xe0] sm:$0xff] }
   0xa   :  { %v513_v40 = vpack.c.bf16 %v26_v38, %v25_v37  ;;  %v319_v42 = vld [vmem:[%s717_s0 + $0xe8] sm:$0xff]  ;;  %v27_v43 = vld [vmem:[%s717_s0 + $0x60] sm:$0xff]  ;;  %v320_v47 = vld [vmem:[%s717_s0 + $0xf0] sm:$0xff] }
   0xb   :  { %v28_v44 = vld [vmem:[%s717_s0 + $0x68] sm:$0xff]  ;;  %v485_v45 = vpack.c.bf16 %v319_v42, %v318_v41  ;;  %v321_v48 = vld [vmem:[%s717_s0 + $0xf8] sm:$0xff]  ;;  %v29_v49 = vld [vmem:[%s717_s0 + $0x70] sm:$0xff] }
   0xc   :  { %467 = vmatpush3.bf16.xpose.msk.msra.mxu0 %vm563_vm1, %v465_v14  ;;  %v517_v46 = vpack.c.bf16 %v28_v44, %v27_v43  ;;  %v30_v50 = vld [vmem:[%s717_s0 + $0x78] sm:$0xff]  ;;  %v489_v51 = vpack.c.bf16 %v321_v48, %v320_v47  ;;  %v305_v53 = vld [vmem:[%s719_s1 + $0x8] sm:$0xff]  ;;  %v14_v54 = vld [vmem:[%s719_s1] sm:$0xff] }
   0xd   :  { %499 = vmatpush3.bf16.xpose.msk.msra.mxu1 %vm563_vm1, %v497_v15  ;;  %468 = vmatprep.subr.bf16.mxu0 %v529_v0  ;;  %v521_v52 = vpack.c.bf16 %v30_v50, %v29_v49 }
   0xe   :  { %500 = vmatprep.subr.bf16.mxu1 %v529_v0 }
  0x14   :  { %471 = vmatpush3.bf16.xpose.msk.msra.mxu0 %vm563_vm1, %v469_v21 }
  0x15   :  { %503 = vmatpush3.bf16.xpose.msk.msra.mxu1 %vm563_vm1, %v501_v22  ;;  %472 = vmatprep.subr.bf16.mxu0 %v529_v0 }
  0x16   :  { %504 = vmatprep.subr.bf16.mxu1 %v529_v0 }
  0x1c   :  { %475 = vmatpush3.bf16.xpose.msk.msra.mxu0 %vm563_vm1, %v473_v27 }
  0x1d   :  { %507 = vmatpush3.bf16.xpose.msk.msra.mxu1 %vm563_vm1, %v505_v28  ;;  %476 = vmatprep.subr.bf16.mxu0 %v529_v0 }
  0x1e   :  { %508 = vmatprep.subr.bf16.mxu1 %v529_v0 }
  0x24   :  { %479 = vmatpush3.bf16.xpose.msk.msra.mxu0 %vm563_vm1, %v477_v33 }
  0x25   :  { %511 = vmatpush3.bf16.xpose.msk.msra.mxu1 %vm563_vm1, %v509_v34  ;;  %480 = vmatprep.subr.bf16.mxu0 %v529_v0 }
  0x26   :  { %512 = vmatprep.subr.bf16.mxu1 %v529_v0 }
  0x2c   :  { %483 = vmatpush3.bf16.xpose.msk.msra.mxu0 %vm563_vm1, %v481_v39 }
  0x2d   :  { %515 = vmatpush3.bf16.xpose.msk.msra.mxu1 %vm563_vm1, %v513_v40  ;;  %484 = vmatprep.subr.bf16.mxu0 %v529_v0 }
  0x2e   :  { %516 = vmatprep.subr.bf16.mxu1 %v529_v0 }
  0x34   :  { %487 = vmatpush3.bf16.xpose.msk.msra.mxu0 %vm563_vm1, %v485_v45 }
  0x35   :  { %519 = vmatpush3.bf16.xpose.msk.msra.mxu1 %vm563_vm1, %v517_v46  ;;  %488 = vmatprep.subr.bf16.mxu0 %v529_v0 }
  0x36   :  { %520 = vmatprep.subr.bf16.mxu1 %v529_v0 }
  0x3c   :  { %491 = vmatpush3.bf16.xpose.msk.msra.mxu0 %vm563_vm1, %v489_v51 }
  0x3d   :  { %523 = vmatpush3.bf16.xpose.msk.msra.mxu1 %vm563_vm1, %v521_v52 }
  0x43   :  { %423 = vmatmul.mubr.msk.f32.vlgmr.msra.gmra.mrb[0].mxu0 %vm50_vm0, %v305_v53 }
  0x44   :  { %458 = vmatmul.mubr.msk.f32.vlgmr.msra.gmra.mrb[0].mxu1 %vm50_vm0, %v14_v54 }
  0x83   :  { %v297_v56 = vpop.permute.xlu0 %296 }
 0x116   :  { %v168_v55 = vpop.f32.mrb[0].mxu0 }
 0x117   :  { %v289_v57 = vpop.f32.mrb[0].mxu1  ;;  %v424_v58 = vpop.f32.mrb[1].mxu0 }
 0x118   :  { %v290_v59 = vadd.f32 %v289_v57, %v168_v55  ;;  %v459_v60 = vpop.f32.mrb[1].mxu1 }
 0x11a   :  { %v299_v61 = vadd.f32 %v297_v56, %v290_v59 }
 0x11c   :  { %300 = vst [vmem:[%s720_s3] sm:$0xff] %v299_v61 }

</bundles_post_ra>
